<compile_context>
chip_gen: v7x
topology: tpu7x:2x2x1
jax: 0.10.0
libtpu: 0.0.40
codegen_flags: <defaults>
</compile_context>

<pallas_src>
import functools

import jax
import jax.numpy as jnp
import numpy as np
from jax import lax
from jax.experimental import pallas as pl
from jax.experimental.pallas import tpu as pltpu


def _mha_kernel(x_q_ref, x_kv_ref, wq_ref, wk_ref, wv_ref, wo_ref, out_ref,
                k_sc, v_sc, *, n_head):
    # x_q_ref : (1, TQ, C)  query rows of this tile
    # x_kv_ref: (1, T,  C)  full sequence (same block for every q-tile of a batch elem)
    # w*_ref  : (C, C)      pre-transposed (in, out); wq has the softmax scale folded in
    # out_ref : (1, TQ, C)
    # k_sc/v_sc: (T, C)     K/V projections cached across q-tiles of one batch element
    qi = pl.program_id(1)

    C = x_kv_ref.shape[2]
    D = C // n_head

    # K/V projection for the whole sequence, computed once per batch element.
    @pl.when(qi == 0)
    def _():
        x_kv = x_kv_ref[0]                                       # (T, C), native dtype
        k_sc[...] = jnp.dot(x_kv, wk_ref[...],
                            preferred_element_type=jnp.float32).astype(k_sc.dtype)
        v_sc[...] = jnp.dot(x_kv, wv_ref[...],
                            preferred_element_type=jnp.float32).astype(v_sc.dtype)

    x_q = x_q_ref[0]                                             # (TQ, C)
    # Q projection; 1/D**power already folded into wq in the wrapper.
    q = jnp.dot(x_q, wq_ref[...],
                preferred_element_type=jnp.float32).astype(x_q.dtype)   # (TQ, C)

    wo = wo_ref[...]                                             # (C, C) = (H*D, C)
    acc = jnp.zeros((x_q.shape[0], C), jnp.float32)

    # n_head is small & static -> unrolled.  The per-head concat is folded into
    # the accumulated output projection (no lane-axis shuffles).
    for h in range(n_head):
        qh = q[:, h * D:(h + 1) * D]                             # (TQ, D)
        kh = k_sc[:, h * D:(h + 1) * D]                          # (T,  D)
        vh = v_sc[:, h * D:(h + 1) * D]                          # (T,  D)

        # scores: contract over D (qd,kd->qk) without materializing k.T
        s = lax.dot_general(qh, kh, (((1,), (1,)), ((), ())),
                            preferred_element_type=jnp.float32)  # (TQ, T) f32
        s = s - jnp.max(s, axis=-1, keepdims=True)
        p = jnp.exp(s)                                           # f32 softmax numerics
        # exact reciprocal: approx=True eats into the 1e-4/1e-5 test tolerance
        inv_l = pl.reciprocal(jnp.sum(p, axis=-1, keepdims=True), approx=False)

        ctx = jnp.dot(p.astype(vh.dtype), vh,
                      preferred_element_type=jnp.float32) * inv_l          # (TQ, D) f32
        acc = acc + jnp.dot(ctx.astype(wo.dtype), wo[h * D:(h + 1) * D, :],
                            preferred_element_type=jnp.float32)            # (TQ, C)

    out_ref[0] = acc.astype(out_ref.dtype)


def multi_head_attention(x, w_qkv, w_o, *, n_head, power, block_q=None):
    """x: (B, T, C); w_qkv: (3C, C) (PyTorch out,in); w_o: (C, C). Returns (B, T, C)."""
    B, T, C = x.shape
    assert C % n_head == 0, "n_embd must be divisible by n_head"
    D = C // n_head
    scale = 1.0 / (float(D) ** power)

    # Hoist the weight transposes out of the kernel (done once in XLA) and fold
    # the softmax temperature into the Q projection weights (free).
    wq_t = (w_qkv[0 * C:1 * C, :] * jnp.asarray(scale, w_qkv.dtype)).T   # (C, C)
    wk_t = w_qkv[1 * C:2 * C, :].T                                       # (C, C)
    wv_t = w_qkv[2 * C:3 * C, :].T                                       # (C, C)
    wo_t = w_o.T                                                         # (C, C)

    # Q-tile size: must divide T and be a multiple of 8 (or equal T).
    if block_q is None:
        block_q = 256 if (T > 256 and T % 256 == 0) else T
    if T % block_q != 0 or (block_q != T and block_q % 8 != 0):
        block_q = T
    n_q = T // block_q

    # Scoped VMEM budget from the tile footprint (double-buffered I/O blocks,
    # K/V scratch, f32 intermediates) with headroom; capped well below v7x physical.
    itemsize = x.dtype.itemsize
    est = (
        2 * block_q * C * itemsize        # x q-tile (double buffered)
        + 2 * T * C * itemsize            # x full-sequence block
        + 2 * 4 * C * C * itemsize        # four (C, C) weight blocks
        + 2 * block_q * C * itemsize      # output tile
        + 2 * T * C * itemsize            # K/V scratch
        + 4 * block_q * T * 4             # scores / probs (f32)
        + 4 * block_q * C * 4             # q / accumulator (f32)
    )
    vmem_limit = int(min(48 * 2 ** 20, max(8 * 2 ** 20, int(est * 1.5))))

    kernel = functools.partial(_mha_kernel, n_head=n_head)
    return pl.pallas_call(
        kernel,
        out_shape=jax.ShapeDtypeStruct((B, T, C), x.dtype),
        grid_spec=pltpu.PrefetchScalarGridSpec(
            num_scalar_prefetch=0,
            grid=(B, n_q),
            in_specs=[
                pl.BlockSpec((1, block_q, C), lambda b, q: (b, q, 0)),   # x (Q rows)
                pl.BlockSpec((1, T, C), lambda b, q: (b, 0, 0)),         # x (K/V rows)
                pl.BlockSpec((C, C), lambda b, q: (0, 0)),               # wq^T (scaled)
                pl.BlockSpec((C, C), lambda b, q: (0, 0)),               # wk^T
                pl.BlockSpec((C, C), lambda b, q: (0, 0)),               # wv^T
                pl.BlockSpec((C, C), lambda b, q: (0, 0)),               # wo^T
            ],
            out_specs=pl.BlockSpec((1, block_q, C), lambda b, q: (b, q, 0)),
            scratch_shapes=[
                pltpu.VMEM((T, C), x.dtype),   # K projection cache
                pltpu.VMEM((T, C), x.dtype),   # V projection cache
            ],
        ),
        compiler_params=pltpu.CompilerParams(
            # Batch axis can shard across TensorCores; the q-tile axis reuses the
            # K/V scratch computed at q-tile 0, so it must stay sequential.
            dimension_semantics=("parallel", "arbitrary"),
            vmem_limit_bytes=vmem_limit,
        ),
    )(x, x, wq_t, wk_t, wv_t, wo_t)


def _reference(x, w_qkv, w_o, *, n_head, power):
    B, T, C = x.shape
    D = C // n_head
    qkv = jnp.einsum("btc,oc->bto", x, w_qkv)
    q, k, v = jnp.split(qkv, 3, axis=-1)
    q = q.reshape(B, T, n_head, D).transpose(0, 2, 1, 3)
    k = k.reshape(B, T, n_head, D).transpose(0, 2, 1, 3)
    v = v.reshape(B, T, n_head, D).transpose(0, 2, 1, 3)
    att = jnp.einsum("bhtd,bhsd->bhts", q, k) / (D ** power)
    att = jax.nn.softmax(att, axis=-1)
    y = jnp.einsum("bhts,bhsd->bhtd", att, v)
    y = y.transpose(0, 2, 1, 3).reshape(B, T, C)
    return jnp.einsum("btc,oc->bto", y, w_o)


if __name__ == "__main__":
    # Config: n_embd=32, n_head=4, dropout=0.0, s=1.0 -> power = 0.5*(1+s) = 1.0
    B, T, C = 2, 8, 32
    n_head = 4
    s = 1.0
    power = 0.5 * (1.0 + s)

    key = jax.random.PRNGKey(0)
    kx, kqkv, ko = jax.random.split(key, 3)

    # Deterministic parameter init (~ nn.Linear uniform(-1/sqrt(in), 1/sqrt(in)))
    bound = 1.0 / np.sqrt(C)
    x = jax.random.normal(kx, (B, T, C), dtype=jnp.float32)
    w_qkv = jax.random.uniform(kqkv, (3 * C, C), jnp.float32, -bound, bound)
    w_o = jax.random.uniform(ko, (C, C), jnp.float32, -bound, bound)

    out = multi_head_attention(x, w_qkv, w_o, n_head=n_head, power=power)
    out = jax.block_until_ready(out)

    ref = _reference(x, w_qkv, w_o, n_head=n_head, power=power)
    np.testing.assert_allclose(np.asarray(out), np.asarray(ref), rtol=1e-4, atol=1e-5)

    print("KERNEL_OK")
</pallas_src>

<mosaic_0001>
module attributes {stable_mosaic.version = 11 : i64} {
  func.func @_mha_kernel(%arg0: i32, %arg1: i32, %arg2: memref<1x8x32xf32, #tpu.memory_space<vmem>>, %arg3: memref<1x8x32xf32, #tpu.memory_space<vmem>>, %arg4: memref<32x32xf32, #tpu.memory_space<vmem>>, %arg5: memref<32x32xf32, #tpu.memory_space<vmem>>, %arg6: memref<32x32xf32, #tpu.memory_space<vmem>>, %arg7: memref<32x32xf32, #tpu.memory_space<vmem>>, %arg8: memref<1x8x32xf32, #tpu.memory_space<vmem>>, %arg9: memref<8x32xf32, #tpu.memory_space<vmem>>, %arg10: memref<8x32xf32, #tpu.memory_space<vmem>>) attributes {dimension_semantics = [#tpu.dimension_semantics<parallel>, #tpu.dimension_semantics<arbitrary>], iteration_bounds = array<i64: 2, 1>, scalar_prefetch = 0 : i64, scratch_operands = 2 : i64, tpu.core_type = #tpu.core_type<tc>, window_params = [{transform_indices = @transform_0, window_bounds = array<i64: 1, 8, 32>}, {transform_indices = @transform_1, window_bounds = array<i64: 1, 8, 32>}, {pipeline_mode = #tpu.pipeline_mode<synchronous>, transform_indices = @transform_2, window_bounds = array<i64: 32, 32>}, {pipeline_mode = #tpu.pipeline_mode<synchronous>, transform_indices = @transform_3, window_bounds = array<i64: 32, 32>}, {pipeline_mode = #tpu.pipeline_mode<synchronous>, transform_indices = @transform_4, window_bounds = array<i64: 32, 32>}, {pipeline_mode = #tpu.pipeline_mode<synchronous>, transform_indices = @transform_5, window_bounds = array<i64: 32, 32>}, {transform_indices = @transform_6, window_bounds = array<i64: 1, 8, 32>}]} {
    %c0_i32 = arith.constant 0 : i32
    %0 = arith.cmpi eq, %arg1, %c0_i32 : i32
    %1 = arith.extui %0 : i1 to i32
    %c0_i32_0 = arith.constant 0 : i32
    %2 = arith.cmpi ne, %1, %c0_i32_0 : i32
    scf.if %2 {
      %c0_44 = arith.constant 0 : index
      %c0_45 = arith.constant 0 : index
      %c0_46 = arith.constant 0 : index
      %84 = vector.load %arg3[%c0_44, %c0_45, %c0_46] : memref<1x8x32xf32, #tpu.memory_space<vmem>>, vector<1x8x32xf32>
      %85 = vector.shape_cast %84 : vector<1x8x32xf32> to vector<8x32xf32>
      %c0_47 = arith.constant 0 : index
      %c0_48 = arith.constant 0 : index
      %86 = vector.load %arg5[%c0_47, %c0_48] : memref<32x32xf32, #tpu.memory_space<vmem>>, vector<32x32xf32>
      %cst_49 = arith.constant dense<0.000000e+00> : vector<8x32xf32>
      %87 = tpu.matmul %85, %86, %cst_49 {dimension_numbers = #tpu.dot_dimension_numbers<[1], [0], [0], [1], [0, 0, 1, 1], [], []>} : vector<8x32xf32>, vector<32x32xf32>, vector<8x32xf32> -> vector<8x32xf32>
      %c0_50 = arith.constant 0 : index
      %c0_51 = arith.constant 0 : index
      %88 = vector.load %arg9[%c0_50, %c0_51] : memref<8x32xf32, #tpu.memory_space<vmem>>, vector<8x32xf32>
      tpu.vector_store %arg9[%c0_50, %c0_51], %87 {strides = array<i32>} : memref<8x32xf32, #tpu.memory_space<vmem>>, vector<8x32xf32>,
      %c0_52 = arith.constant 0 : index
      %c0_53 = arith.constant 0 : index
      %89 = vector.load %arg6[%c0_52, %c0_53] : memref<32x32xf32, #tpu.memory_space<vmem>>, vector<32x32xf32>
      %cst_54 = arith.constant dense<0.000000e+00> : vector<8x32xf32>
      %90 = tpu.matmul %85, %89, %cst_54 {dimension_numbers = #tpu.dot_dimension_numbers<[1], [0], [0], [1], [0, 0, 1, 1], [], []>} : vector<8x32xf32>, vector<32x32xf32>, vector<8x32xf32> -> vector<8x32xf32>
      %c0_55 = arith.constant 0 : index
      %c0_56 = arith.constant 0 : index
      %91 = vector.load %arg10[%c0_55, %c0_56] : memref<8x32xf32, #tpu.memory_space<vmem>>, vector<8x32xf32>
      tpu.vector_store %arg10[%c0_55, %c0_56], %90 {strides = array<i32>} : memref<8x32xf32, #tpu.memory_space<vmem>>, vector<8x32xf32>,
    } else {
    }
    %c0 = arith.constant 0 : index
    %c0_1 = arith.constant 0 : index
    %c0_2 = arith.constant 0 : index
    %3 = vector.load %arg2[%c0, %c0_1, %c0_2] : memref<1x8x32xf32, #tpu.memory_space<vmem>>, vector<1x8x32xf32>
    %4 = vector.shape_cast %3 : vector<1x8x32xf32> to vector<8x32xf32>
    %c0_3 = arith.constant 0 : index
    %c0_4 = arith.constant 0 : index
    %5 = vector.load %arg4[%c0_3, %c0_4] : memref<32x32xf32, #tpu.memory_space<vmem>>, vector<32x32xf32>
    %cst = arith.constant dense<0.000000e+00> : vector<8x32xf32>
    %6 = tpu.matmul %4, %5, %cst {dimension_numbers = #tpu.dot_dimension_numbers<[1], [0], [0], [1], [0, 0, 1, 1], [], []>} : vector<8x32xf32>, vector<32x32xf32>, vector<8x32xf32> -> vector<8x32xf32>
    %c0_5 = arith.constant 0 : index
    %c0_6 = arith.constant 0 : index
    %7 = vector.load %arg7[%c0_5, %c0_6] : memref<32x32xf32, #tpu.memory_space<vmem>>, vector<32x32xf32>
    %cst_7 = arith.constant 0.000000e+00 : f32
    %8 = vector.broadcast %cst_7 : f32 to vector<8x32xf32>
    %9 = vector.extract_strided_slice %6 {offsets = [0, 0], sizes = [8, 8], strides = [1, 1]} : vector<8x32xf32> to vector<8x8xf32>
    %c0_8 = arith.constant 0 : index
    %c0_9 = arith.constant 0 : index
    %10 = vector.load %arg9[%c0_8, %c0_9] : memref<8x32xf32, #tpu.memory_space<vmem>>, vector<8x8xf32>
    %c0_10 = arith.constant 0 : index
    %c0_11 = arith.constant 0 : index
    %11 = vector.load %arg10[%c0_10, %c0_11] : memref<8x32xf32, #tpu.memory_space<vmem>>, vector<8x8xf32>
    %cst_12 = arith.constant dense<0.000000e+00> : vector<8x8xf32>
    %12 = tpu.matmul %9, %10, %cst_12 {dimension_numbers = #tpu.dot_dimension_numbers<[1], [1], [0], [0], [0, 0, 1, 0], [], []>} : vector<8x8xf32>, vector<8x8xf32>, vector<8x8xf32> -> vector<8x8xf32>
    %cst_13 = arith.constant dense<0xFF800000> : vector<8xf32>
    %13 = vector.multi_reduction <maximumf>, %12, %cst_13 [1] : vector<8x8xf32> to vector<8xf32>
    %14 = vector.shape_cast %13 : vector<8xf32> to vector<8x1xf32>
    %15 = vector.broadcast %14 : vector<8x1xf32> to vector<8x8xf32>
    %16 = arith.subf %12, %15 : vector<8x8xf32>
    %17 = math.exp %16 : vector<8x8xf32>
    %cst_14 = arith.constant dense<0.000000e+00> : vector<8xf32>
    %18 = vector.multi_reduction <add>, %17, %cst_14 [1] : vector<8x8xf32> to vector<8xf32>
    %19 = vector.shape_cast %18 : vector<8xf32> to vector<8x1xf32>
    %20 = tpu.reciprocal %19 : vector<8x1xf32> -> vector<8x1xf32>
    %cst_15 = arith.constant dense<0.000000e+00> : vector<8x8xf32>
    %21 = tpu.matmul %17, %11, %cst_15 {dimension_numbers = #tpu.dot_dimension_numbers<[1], [0], [0], [1], [0, 0, 1, 1], [], []>} : vector<8x8xf32>, vector<8x8xf32>, vector<8x8xf32> -> vector<8x8xf32>
    %22 = vector.broadcast %20 : vector<8x1xf32> to vector<8x8xf32>
    %23 = arith.mulf %21, %22 : vector<8x8xf32>
    %24 = vector.extract_strided_slice %7 {offsets = [0, 0], sizes = [8, 32], strides = [1, 1]} : vector<32x32xf32> to vector<8x32xf32>
    %cst_16 = arith.constant dense<0.000000e+00> : vector<8x32xf32>
    %25 = tpu.matmul %23, %24, %cst_16 {dimension_numbers = #tpu.dot_dimension_numbers<[1], [0], [0], [1], [0, 0, 1, 1], [], []>} : vector<8x8xf32>, vector<8x32xf32>, vector<8x32xf32> -> vector<8x32xf32>
    %26 = arith.addf %8, %25 : vector<8x32xf32>
    %27 = vector.extract_strided_slice %6 {offsets = [0, 8], sizes = [8, 8], strides = [1, 1]} : vector<8x32xf32> to vector<8x8xf32>
    %c0_17 = arith.constant 0 : index
    %c8 = arith.constant 8 : index
    %28 = vector.load %arg9[%c0_17, %c8] : memref<8x32xf32, #tpu.memory_space<vmem>>, vector<8x8xf32>
    %c0_18 = arith.constant 0 : index
    %c8_19 = arith.constant 8 : index
    %29 = vector.load %arg10[%c0_18, %c8_19] : memref<8x32xf32, #tpu.memory_space<vmem>>, vector<8x8xf32>
    %cst_20 = arith.constant dense<0.000000e+00> : vector<8x8xf32>
    %30 = tpu.matmul %27, %28, %cst_20 {dimension_numbers = #tpu.dot_dimension_numbers<[1], [1], [0], [0], [0, 0, 1, 0], [], []>} : vector<8x8xf32>, vector<8x8xf32>, vector<8x8xf32> -> vector<8x8xf32>
    %cst_21 = arith.constant dense<0xFF800000> : vector<8xf32>
    %31 = vector.multi_reduction <maximumf>, %30, %cst_21 [1] : vector<8x8xf32> to vector<8xf32>
    %32 = vector.shape_cast %31 : vector<8xf32> to vector<8x1xf32>
    %33 = vector.broadcast %32 : vector<8x1xf32> to vector<8x8xf32>
    %34 = arith.subf %30, %33 : vector<8x8xf32>
    %35 = math.exp %34 : vector<8x8xf32>
    %cst_22 = arith.constant dense<0.000000e+00> : vector<8xf32>
    %36 = vector.multi_reduction <add>, %35, %cst_22 [1] : vector<8x8xf32> to vector<8xf32>
    %37 = vector.shape_cast %36 : vector<8xf32> to vector<8x1xf32>
    %38 = tpu.reciprocal %37 : vector<8x1xf32> -> vector<8x1xf32>
    %cst_23 = arith.constant dense<0.000000e+00> : vector<8x8xf32>
    %39 = tpu.matmul %35, %29, %cst_23 {dimension_numbers = #tpu.dot_dimension_numbers<[1], [0], [0], [1], [0, 0, 1, 1], [], []>} : vector<8x8xf32>, vector<8x8xf32>, vector<8x8xf32> -> vector<8x8xf32>
    %40 = vector.broadcast %38 : vector<8x1xf32> to vector<8x8xf32>
    %41 = arith.mulf %39, %40 : vector<8x8xf32>
    %42 = vector.extract_strided_slice %7 {offsets = [8, 0], sizes = [8, 32], strides = [1, 1]} : vector<32x32xf32> to vector<8x32xf32>
    %cst_24 = arith.constant dense<0.000000e+00> : vector<8x32xf32>
    %43 = tpu.matmul %41, %42, %cst_24 {dimension_numbers = #tpu.dot_dimension_numbers<[1], [0], [0], [1], [0, 0, 1, 1], [], []>} : vector<8x8xf32>, vector<8x32xf32>, vector<8x32xf32> -> vector<8x32xf32>
    %44 = arith.addf %26, %43 : vector<8x32xf32>
    %45 = vector.extract_strided_slice %6 {offsets = [0, 16], sizes = [8, 8], strides = [1, 1]} : vector<8x32xf32> to vector<8x8xf32>
    %c0_25 = arith.constant 0 : index
    %c16 = arith.constant 16 : index
    %46 = vector.load %arg9[%c0_25, %c16] : memref<8x32xf32, #tpu.memory_space<vmem>>, vector<8x8xf32>
    %c0_26 = arith.constant 0 : index
    %c16_27 = arith.constant 16 : index
    %47 = vector.load %arg10[%c0_26, %c16_27] : memref<8x32xf32, #tpu.memory_space<vmem>>, vector<8x8xf32>
    %cst_28 = arith.constant dense<0.000000e+00> : vector<8x8xf32>
    %48 = tpu.matmul %45, %46, %cst_28 {dimension_numbers = #tpu.dot_dimension_numbers<[1], [1], [0], [0], [0, 0, 1, 0], [], []>} : vector<8x8xf32>, vector<8x8xf32>, vector<8x8xf32> -> vector<8x8xf32>
    %cst_29 = arith.constant dense<0xFF800000> : vector<8xf32>
    %49 = vector.multi_reduction <maximumf>, %48, %cst_29 [1] : vector<8x8xf32> to vector<8xf32>
    %50 = vector.shape_cast %49 : vector<8xf32> to vector<8x1xf32>
    %51 = vector.broadcast %50 : vector<8x1xf32> to vector<8x8xf32>
    %52 = arith.subf %48, %51 : vector<8x8xf32>
    %53 = math.exp %52 : vector<8x8xf32>
    %cst_30 = arith.constant dense<0.000000e+00> : vector<8xf32>
    %54 = vector.multi_reduction <add>, %53, %cst_30 [1] : vector<8x8xf32> to vector<8xf32>
    %55 = vector.shape_cast %54 : vector<8xf32> to vector<8x1xf32>
    %56 = tpu.reciprocal %55 : vector<8x1xf32> -> vector<8x1xf32>
    %cst_31 = arith.constant dense<0.000000e+00> : vector<8x8xf32>
    %57 = tpu.matmul %53, %47, %cst_31 {dimension_numbers = #tpu.dot_dimension_numbers<[1], [0], [0], [1], [0, 0, 1, 1], [], []>} : vector<8x8xf32>, vector<8x8xf32>, vector<8x8xf32> -> vector<8x8xf32>
    %58 = vector.broadcast %56 : vector<8x1xf32> to vector<8x8xf32>
    %59 = arith.mulf %57, %58 : vector<8x8xf32>
    %60 = vector.extract_strided_slice %7 {offsets = [16, 0], sizes = [8, 32], strides = [1, 1]} : vector<32x32xf32> to vector<8x32xf32>
    %cst_32 = arith.constant dense<0.000000e+00> : vector<8x32xf32>
    %61 = tpu.matmul %59, %60, %cst_32 {dimension_numbers = #tpu.dot_dimension_numbers<[1], [0], [0], [1], [0, 0, 1, 1], [], []>} : vector<8x8xf32>, vector<8x32xf32>, vector<8x32xf32> -> vector<8x32xf32>
    %62 = arith.addf %44, %61 : vector<8x32xf32>
    %63 = vector.extract_strided_slice %6 {offsets = [0, 24], sizes = [8, 8], strides = [1, 1]} : vector<8x32xf32> to vector<8x8xf32>
    %c0_33 = arith.constant 0 : index
    %c24 = arith.constant 24 : index
    %64 = vector.load %arg9[%c0_33, %c24] : memref<8x32xf32, #tpu.memory_space<vmem>>, vector<8x8xf32>
    %c0_34 = arith.constant 0 : index
    %c24_35 = arith.constant 24 : index
    %65 = vector.load %arg10[%c0_34, %c24_35] : memref<8x32xf32, #tpu.memory_space<vmem>>, vector<8x8xf32>
    %cst_36 = arith.constant dense<0.000000e+00> : vector<8x8xf32>
    %66 = tpu.matmul %63, %64, %cst_36 {dimension_numbers = #tpu.dot_dimension_numbers<[1], [1], [0], [0], [0, 0, 1, 0], [], []>} : vector<8x8xf32>, vector<8x8xf32>, vector<8x8xf32> -> vector<8x8xf32>
    %cst_37 = arith.constant dense<0xFF800000> : vector<8xf32>
    %67 = vector.multi_reduction <maximumf>, %66, %cst_37 [1] : vector<8x8xf32> to vector<8xf32>
    %68 = vector.shape_cast %67 : vector<8xf32> to vector<8x1xf32>
    %69 = vector.broadcast %68 : vector<8x1xf32> to vector<8x8xf32>
    %70 = arith.subf %66, %69 : vector<8x8xf32>
    %71 = math.exp %70 : vector<8x8xf32>
    %cst_38 = arith.constant dense<0.000000e+00> : vector<8xf32>
    %72 = vector.multi_reduction <add>, %71, %cst_38 [1] : vector<8x8xf32> to vector<8xf32>
    %73 = vector.shape_cast %72 : vector<8xf32> to vector<8x1xf32>
    %74 = tpu.reciprocal %73 : vector<8x1xf32> -> vector<8x1xf32>
    %cst_39 = arith.constant dense<0.000000e+00> : vector<8x8xf32>
    %75 = tpu.matmul %71, %65, %cst_39 {dimension_numbers = #tpu.dot_dimension_numbers<[1], [0], [0], [1], [0, 0, 1, 1], [], []>} : vector<8x8xf32>, vector<8x8xf32>, vector<8x8xf32> -> vector<8x8xf32>
    %76 = vector.broadcast %74 : vector<8x1xf32> to vector<8x8xf32>
    %77 = arith.mulf %75, %76 : vector<8x8xf32>
    %78 = vector.extract_strided_slice %7 {offsets = [24, 0], sizes = [8, 32], strides = [1, 1]} : vector<32x32xf32> to vector<8x32xf32>
    %cst_40 = arith.constant dense<0.000000e+00> : vector<8x32xf32>
    %79 = tpu.matmul %77, %78, %cst_40 {dimension_numbers = #tpu.dot_dimension_numbers<[1], [0], [0], [1], [0, 0, 1, 1], [], []>} : vector<8x8xf32>, vector<8x32xf32>, vector<8x32xf32> -> vector<8x32xf32>
    %80 = arith.addf %62, %79 : vector<8x32xf32>
    %c0_41 = arith.constant 0 : index
    %c0_42 = arith.constant 0 : index
    %c0_43 = arith.constant 0 : index
    %81 = vector.load %arg8[%c0_41, %c0_42, %c0_43] : memref<1x8x32xf32, #tpu.memory_space<vmem>>, vector<1x8x32xf32>
    %82 = vector.shape_cast %81 : vector<1x8x32xf32> to vector<8x32xf32>
    %83 = vector.shape_cast %80 : vector<8x32xf32> to vector<1x8x32xf32>
    tpu.vector_store %arg8[%c0_41, %c0_42, %c0_43], %83 {strides = array<i32>} : memref<1x8x32xf32, #tpu.memory_space<vmem>>, vector<1x8x32xf32>,
    return
  }
  func.func @transform_0(%arg0: i32, %arg1: i32) -> (i32, i32, i32) {
    %c0_i32 = arith.constant 0 : i32
    %c0_i32_0 = arith.constant 0 : i32
    return %arg0, %arg1, %c0_i32 : i32, i32, i32
  }
  func.func @transform_1(%arg0: i32, %arg1: i32) -> (i32, i32, i32) {
    %c0_i32 = arith.constant 0 : i32
    %c0_i32_0 = arith.constant 0 : i32
    %c0_i32_1 = arith.constant 0 : i32
    return %arg0, %c0_i32, %c0_i32_0 : i32, i32, i32
  }
  func.func @transform_2(%arg0: i32, %arg1: i32) -> (i32, i32) {
    %c0_i32 = arith.constant 0 : i32
    %c0_i32_0 = arith.constant 0 : i32
    %c0_i32_1 = arith.constant 0 : i32
    return %c0_i32, %c0_i32_0 : i32, i32
  }
  func.func @transform_3(%arg0: i32, %arg1: i32) -> (i32, i32) {
    %c0_i32 = arith.constant 0 : i32
    %c0_i32_0 = arith.constant 0 : i32
    %c0_i32_1 = arith.constant 0 : i32
    return %c0_i32, %c0_i32_0 : i32, i32
  }
  func.func @transform_4(%arg0: i32, %arg1: i32) -> (i32, i32) {
    %c0_i32 = arith.constant 0 : i32
    %c0_i32_0 = arith.constant 0 : i32
    %c0_i32_1 = arith.constant 0 : i32
    return %c0_i32, %c0_i32_0 : i32, i32
  }
  func.func @transform_5(%arg0: i32, %arg1: i32) -> (i32, i32) {
    %c0_i32 = arith.constant 0 : i32
    %c0_i32_0 = arith.constant 0 : i32
    %c0_i32_1 = arith.constant 0 : i32
    return %c0_i32, %c0_i32_0 : i32, i32
  }
  func.func @transform_6(%arg0: i32, %arg1: i32) -> (i32, i32, i32) {
    %c0_i32 = arith.constant 0 : i32
    %c0_i32_0 = arith.constant 0 : i32
    return %arg0, %arg1, %c0_i32 : i32, i32, i32
  }
}

</mosaic_0001>

<bundles_post_ra>
// kernel: tpu_custom_call.1
= control target key start
LH: loop header
LB: loop body
LE: loop exit
PB: predicated region body
PF: predicated region fallthrough
CT: control target
= control target key end

     0   :  { %s2815_s0 = inlined_call_operand.hbm [shape: f32[2,8,32], index: 0, kind: input, shape index: {}]   ;;  %s2816_s1 = inlined_call_operand.hbm [shape: f32[2,8,32], index: 1, kind: input, shape index: {}]   ;;  %s2817_s2 = inlined_call_operand.hbm [shape: f32[32,32], index: 2, kind: input, shape index: {}]   ;;  %s2818_s3 = inlined_call_operand.hbm [shape: f32[32,32], index: 3, kind: input, shape index: {}]   ;;  %s2819_s4 = inlined_call_operand.hbm [shape: f32[32,32], index: 4, kind: input, shape index: {}]   ;;  %s2820_s5 = inlined_call_operand.hbm [shape: f32[32,32], index: 5, kind: input, shape index: {}]   ;;  %s2821_s6 = inlined_call_operand.hbm [shape: f32[2,8,32], index: 6, kind: output, shape index: {}]  }
   0x1   :  { %2827 = sst [smem:[#allocation23_spill]] %s2817_s2 }
   0x2   :  { %2828 = sst [smem:[#allocation24_spill]] %s2818_s3 }
   0x3   :  { %2829 = sst [smem:[#allocation25_spill]] %s2819_s4 }
   0x4   :  { %2830 = sst [smem:[#allocation26_spill]] %s2820_s5 }
   0x5   :  { %11 = vsyncpa [#allocation5], 0 }
   0x6   :  { %13 = vsyncpa [#allocation5 + $0x1], 0 }
   0x7   :  { %14 = vsyncpa [#allocation8], 0 }
   0x8   :  { %16 = vsyncpa [#allocation8 + $0x1], 0 }
   0x9   :  { %17 = vsyncpa [#allocation11], 0 }
   0xa   :  { %18 = vsyncpa [#allocation14], 0 }
   0xb   :  { %19 = vsyncpa [#allocation6], 0 }
   0xc   :  { %21 = vsyncpa [#allocation6 + $0x1], 0  ;;  %s2384_s21 = smov 0   ;;  %s2386_s22 = smov 0  }
   0xd   :  { %s2388_s23 = smov 0   ;;  %s2390_s24 = smov 0  }
   0xe   :  { %s2392_s25 = smov 0   ;;  %s2394_s26 = smov 0  }
   0xf LB: > { %s2415_s27 = sadd.s32 4294967295, %s2332_s26   ;;  %p1733_p0 = scmp.ge.s32.totalorder %s2332_s26, 1  ;;  %s2332_s26 = sphi %s2394_s26, %s27_s26   ;;  %s2328_s25 = sphi %s2392_s25, %s2861_s25   ;;  %s2324_s24 = sphi %s2390_s24, %s2860_s24   ;;  %s2320_s23 = sphi %s2388_s23, %s2859_s23   ;;  %s2316_s22 = sphi %s2386_s22, %s2858_s22   ;;  %s2312_s21 = sphi %s2384_s21, %s2857_s21  }
  0x10   : > { %p2822_p1 = scmp.eq.s32.totalorder %s2415_s27, 0  ;;  %p210_p2 = scmp.lt.s32.totalorder %s2332_s26, 3 }
  0x11   : > { %s2334_s29 = smov [#allocation9]   ;;  %s2335_s8 = smov [#allocation10]  }
  0x12   : > { %p2420_p3 = pnand %p1733_p0, %p210_p2  ;;  %s222_s30 = sshll.u32 %s2334_s29, 4  ;;  %s2424_s30 = int_to_ptr.vmem [resolvable:$true] %s222_s30 }
  0x13   : > { %s235_s9 = sshll.u32 %s2335_s8, 4  ;;  %s2336_s10 = smov [#allocation12]   ;;  %s2435_s9 = int_to_ptr.vmem [resolvable:$true] %s235_s9 }
  0x14   : > { %s2831_s28 = scalar_select %p2420_p3, 1, 0 }
  0x15   : > { %p1952_p4 = pneg %p2420_p3  ;;  %s2437_s11 = sshll.u32 %s2336_s10, 4  ;;  %s249_s11 = int_to_ptr.vmem [resolvable:$true] %s2437_s11 }
  0x16   : > { %s2833_s2 = sld [smem:[#allocation23_spill]] }
  0x17   : > { %p2431_p6 = pnand %p1952_p4, %p2822_p1 }
  0x19   : > { %p2447_p8 = pneg %p2431_p6 }
  0x1c   : > { %s2062_s14 = scalar_lea.hbm %s2833_s2, 512 }
  0x1d   : > { %p2063_p7 = scmp.ne.s32.totalorder %s2833_s2, %s2062_s14  ;;  %p2069_p11 = scmp.lt.u32.totalorder %s2062_s14, %s2833_s2 }
  0x1f   : > { %p2065_p9 = pnand %p2447_p8, %p2063_p7 }
  0x21   : > { %p2066_p10 = pneg %p2065_p9 }
  0x23   : > { %p2071_p12 = pnand %p2069_p11, %p2066_p10 }
  0x25   : > { %2074 = shalt.err (!%p2071_p12)
}
  0x26   : > { %s2075_s20 = scalar_lea.vmem %s2424_s30, 512  ;;  %p2083_p4 = scmp.lt.s32.totalorder %s2424_s30, %s2424_s30 }
  0x27   : > { %p2076_p13 = scmp.ne.s32.totalorder %s2424_s30, %s2075_s20  ;;  %p2084_p5 = scmp.lt.s32.totalorder %s2075_s20, %s2075_s20 }
  0x29   : > { %p2078_p0 = pnand %p2076_p13, %p2447_p8  ;;  %p2085_p7 = por %p2084_p5, %p2083_p4 }
  0x2b   : > { %p2079_p2 = pneg %p2078_p0 }
  0x2d   : > { %p2086_p9 = pnand %p2085_p7, %p2079_p2 }
  0x2f   : > { %2089 = shalt.err (!%p2086_p9)
}
  0x30   : > { %s2337_s29 = smov 128   ;;  %s2338_s8 = smov 8  }
  0x31   : > { %1955 = dma.hbm_to_vmem [thread:$0]  (!%p2431_p6), %s2833_s2, 512, %s2424_s30, [#allocation8], %s2337_s29, %s2337_s29, %s2338_s8  }
  0x32   : > { %s2835_s3 = sld [smem:[#allocation24_spill]] }
  0x38   : > { %s2090_s15 = scalar_lea.hbm %s2835_s3, 512 }
  0x39   : > { %p2091_p5 = scmp.ne.s32.totalorder %s2835_s3, %s2090_s15  ;;  %p2097_p12 = scmp.lt.u32.totalorder %s2090_s15, %s2835_s3 }
  0x3b   : > { %p2093_p10 = pnand %p2091_p5, %p2447_p8 }
  0x3d   : > { %p2094_p11 = pneg %p2093_p10 }
  0x3f   : > { %p2099_p13 = pnand %p2097_p12, %p2094_p11 }
  0x41   : > { %2102 = shalt.err (!%p2099_p13)
}
  0x42   : > { %s2103_s30 = scalar_lea.vmem %s2435_s9, 512  ;;  %p2111_p7 = scmp.lt.s32.totalorder %s2435_s9, %s2435_s9 }
  0x43   : > { %p2104_p0 = scmp.ne.s32.totalorder %s2435_s9, %s2103_s30  ;;  %p2112_p9 = scmp.lt.s32.totalorder %s2103_s30, %s2103_s30 }
  0x45   : > { %p2106_p2 = pnand %p2104_p0, %p2447_p8  ;;  %p2113_p5 = por %p2112_p9, %p2111_p7 }
  0x47   : > { %p2107_p4 = pneg %p2106_p2 }
  0x49   : > { %p2114_p10 = pnand %p2113_p5, %p2107_p4 }
  0x4b   : > { %2117 = shalt.err (!%p2114_p10)
}
  0x4c   : > { %1958 = dma.hbm_to_vmem [thread:$0]  (!%p2431_p6), %s2835_s3, 512, %s2435_s9, [#allocation11], %s2337_s29, %s2337_s29, %s2338_s8  }
  0x4d   : > { %s2836_s4 = sld [smem:[#allocation25_spill]] }
  0x53   : > { %s2118_s15 = scalar_lea.hbm %s2836_s4, 512 }
  0x54   : > { %p2119_p11 = scmp.ne.s32.totalorder %s2836_s4, %s2118_s15  ;;  %p2125_p0 = scmp.lt.u32.totalorder %s2118_s15, %s2836_s4 }
  0x56   : > { %p2121_p12 = pnand %p2119_p11, %p2447_p8 }
  0x58   : > { %p2122_p13 = pneg %p2121_p12 }
  0x5a   : > { %p2127_p2 = pnand %p2125_p0, %p2122_p13 }
  0x5c   : > { %2130 = shalt.err (!%p2127_p2)
}
  0x5d   : > { %s2131_s30 = scalar_lea.vmem %s249_s11, 512  ;;  %p2139_p5 = scmp.lt.s32.totalorder %s249_s11, %s249_s11 }
  0x5e   : > { %p2132_p4 = scmp.ne.s32.totalorder %s249_s11, %s2131_s30  ;;  %p2140_p10 = scmp.lt.s32.totalorder %s2131_s30, %s2131_s30 }
  0x60   : > { %p2134_p7 = pnand %p2132_p4, %p2447_p8  ;;  %p2141_p1 = por %p2140_p10, %p2139_p5 }
  0x62   : > { %p2135_p9 = pneg %p2134_p7 }
  0x64   : > { %p2142_p3 = pnand %p2141_p1, %p2135_p9 }
  0x66   : > { %2145 = shalt.err (!%p2142_p3)
}
  0x67   : > { %1961 = dma.hbm_to_vmem [thread:$0]  (!%p2431_p6), %s2836_s4, 512, %s249_s11, [#allocation11], %s2337_s29, %s2337_s29, %s2338_s8  }
  0x68   : > { %s2339_s12 = smov [#allocation13]   ;;  %s2837_s5 = sld [smem:[#allocation26_spill]] }
  0x69   : > { %s261_s13 = sshll.u32 %s2339_s12, 4  ;;  %s262_s13 = int_to_ptr.vmem [resolvable:$true] %s261_s13 }
  0x6e   : > { %s2146_s16 = scalar_lea.hbm %s2837_s5, 512 }
  0x6f   : > { %p2147_p1 = scmp.ne.s32.totalorder %s2837_s5, %s2146_s16  ;;  %p2153_p12 = scmp.lt.u32.totalorder %s2146_s16, %s2837_s5 }
  0x71   : > { %p2149_p3 = pnand %p2147_p1, %p2447_p8 }
  0x73   : > { %p2150_p11 = pneg %p2149_p3 }
  0x75   : > { %p2155_p13 = pnand %p2153_p12, %p2150_p11 }
  0x77   : > { %2158 = shalt.err (!%p2155_p13)
}
  0x78   : > { %s2159_s11 = scalar_lea.vmem %s262_s13, 512  ;;  %p2167_p7 = scmp.lt.s32.totalorder %s262_s13, %s262_s13 }
  0x79   : > { %p2160_p0 = scmp.ne.s32.totalorder %s262_s13, %s2159_s11  ;;  %p2168_p9 = scmp.lt.s32.totalorder %s2159_s11, %s2159_s11 }
  0x7b   : > { %p2162_p2 = pnand %p2160_p0, %p2447_p8  ;;  %p2169_p5 = por %p2168_p9, %p2167_p7 }
  0x7d   : > { %p2163_p4 = pneg %p2162_p2 }
  0x7f   : > { %p2170_p10 = pnand %p2169_p5, %p2163_p4 }
  0x81   : > { %2173 = shalt.err (!%p2170_p10)
}
  0x82   : > { %1964 = dma.hbm_to_vmem [thread:$0]  (!%p2431_p6), %s2837_s5, 512, %s262_s13, [#allocation14], %s2337_s29, %s2337_s29, %s2338_s8  }
  0x83   : > { %s1732_s7 = sadd.s32 4294967294, %s2332_s26   ;;  %s39_s17 = sadd.s32 1, %s2328_s25 }
  0x84   : > { %p41_p8 = scmp.ge.s32.totalorder %s39_s17, 2  ;;  %s48_s12 = sadd.s32 1, %s2320_s23 }
  0x85   : > { %p55_p1 = scmp.ne.s32.totalorder %s2320_s23, %s2316_s22  ;;  %p56_p3 = scmp.eq.s32.totalorder %s2332_s26, 0 }
  0x86   : > { %s2863_s17 = smov (%p41_p8, %s39_s17), 0  ;;  %p61_p12 = scmp.ne.s32.totalorder %s2316_s22, %s2312_s21 }
  0x87   : > { %2838 = sst [smem:[#allocation22_spill]] %s2863_s17  ;;  %p2548_p11 = por %p56_p3, %p55_p1 }
  0x88   : > { %s43_s29 = ssub.s32 %s2328_s25, %s2863_s17  ;;  %p197_p6 = scmp.eq.s32.totalorder %s2415_s27, 1 }
  0x89   : > { %p46_p13 = scmp.eq.s32.totalorder %s43_s29, 0  ;;  %p2840_p0 = scmp.eq.s32.totalorder %s2415_s27, 0 }
  0x8a   : > { %p2563_p4 = por %p197_p6, %p55_p1  ;;  %p203_p7 = scmp.eq.s32.totalorder %s1732_s7, 1 }
  0x8b   : > { %p2559_p2 = por %p2840_p0, %p61_p12  ;;  %p1980_p5 = scmp.lt.s32.totalorder %s2332_s26, 2 }
  0x8c   : > { %s2842_s13 = scalar_select %p2563_p4, 1, 0 }
  0x8d   : > { %s2841_s8 = scalar_select %p2559_p2, 1, 0 }
  0x8e   : > { %s2568_s15 = scalar_select %p46_p13, %s2320_s23, %s48_s12  }
  0x8f   : > { %p2570_p9 = por %p203_p7, %p61_p12  ;;  %s275_s18 = sand.u32 1, %s2320_s23  }
  0x90   : > { %s1740_s19 = sshll.u32 %s2328_s25, 7  ;;  %s2577_s20 = sshll.u32 %s275_s18, 3 }
  0x91   : > { %s2843_s16 = scalar_select %p2570_p9, 1, 0 }
  0x92   : > { %s2582_s9 = scalar_lea.hbm %s2815_s0, %s1740_s19  ;;  %s279_s10 = scalar_lea.vmem [#allocation4], %s2577_s20 }
  0x93   : > { %s287_s7 = sshll.u32 %s279_s10, 4  ;;  %p2587_p10 = pnand %p1980_p5, %p2548_p11  ;;  %s2591_s7 = int_to_ptr.vmem [resolvable:$true] %s287_s7 }
  0x94   : > { %s2596_s11 = scalar_lea.hbm %s2816_s1, %s1740_s19  ;;  %s276_s2 = scalar_lea.sflag [#allocation5], %s275_s18 }
  0x95   : > { %s2174_s3 = scalar_lea.hbm %s2582_s9, 128  ;;  %p2176_p1 = pneg %p2587_p10 }
  0x96   : > { %p2175_p8 = scmp.ne.s32.totalorder %s2582_s9, %s2174_s3  ;;  %s2179_s4 = scalar_lea.hbm %s2815_s0, 256 }
  0x97   : > { %p2180_p12 = scmp.lt.u32.totalorder %s2582_s9, %s2815_s0  ;;  %p2181_p6 = scmp.lt.u32.totalorder %s2179_s4, %s2174_s3 }
  0x98   : > { %p2177_p3 = pnand %p2176_p1, %p2175_p8  ;;  %p2183_p0 = scmp.lt.u32.totalorder %s2174_s3, %s2582_s9 }
  0x99   : > { %p2182_p13 = por %p2181_p6, %p2180_p12 }
  0x9a   : > { %p2178_p11 = pneg %p2177_p3 }
  0x9b   : > { %p2184_p7 = por %p2183_p0, %p2182_p13 }
  0x9d   : > { %p2185_p5 = pnand %p2184_p7, %p2178_p11 }
  0x9f   : > { %2188 = shalt.err (!%p2185_p5)
}
  0xa0   : > { %s2189_s18 = scalar_lea.vmem %s2591_s7, 128  ;;  %s2340_s19 = smov [#allocation4]  }
  0xa1   : > { %p2190_p8 = scmp.ne.s32.totalorder %s2591_s7, %s2189_s18  ;;  %s2194_s29 = sshll.u32 %s2340_s19, 4  ;;  %s2195_s29 = int_to_ptr.vmem [resolvable:$false] %s2194_s29 }
  0xa2   : > { %s2196_s5 = scalar_lea.vmem %s2195_s29, 256  ;;  %p2197_p4 = scmp.lt.s32.totalorder %s2591_s7, %s2195_s29 }
  0xa3   : > { %p2192_p3 = pnand %p2190_p8, %p2176_p1  ;;  %p2198_p12 = scmp.lt.s32.totalorder %s2196_s5, %s2189_s18 }
  0xa5   : > { %p2193_p9 = pneg %p2192_p3  ;;  %p2199_p6 = por %p2198_p12, %p2197_p4 }
  0xa7   : > { %p2200_p13 = pnand %p2199_p6, %p2193_p9 }
  0xa9   : > { %2203 = shalt.err (!%p2200_p13)
}
  0xaa   : > { %1968 = dma.hbm_to_vmem [thread:$0]  (!%p2587_p10), %s2582_s9, 128, %s2591_s7, %s276_s2  }
  0xab   : > { %s294_s3 = sand.u32 1, %s2332_s26   ;;  %s298_s4 = scalar_lea.vmem [#allocation7], %s2577_s20 }
  0xac   : > { %s305_s17 = sshll.u32 %s298_s4, 4  ;;  %s295_s30 = scalar_lea.sflag [#allocation8], %s294_s3  ;;  %s306_s17 = int_to_ptr.vmem [resolvable:$true] %s305_s17 }
  0xad   : > { %s2204_s14 = scalar_lea.hbm %s2596_s11, 128  ;;  %s2209_s19 = scalar_lea.hbm %s2816_s1, 256 }
  0xae   : > { %p2205_p4 = scmp.ne.s32.totalorder %s2596_s11, %s2204_s14  ;;  %p2210_p0 = scmp.lt.u32.totalorder %s2596_s11, %s2816_s1 }
  0xaf   : > { %p2211_p7 = scmp.lt.u32.totalorder %s2209_s19, %s2204_s14  ;;  %p2213_p8 = scmp.lt.u32.totalorder %s2204_s14, %s2596_s11 }
  0xb0   : > { %p2207_p9 = pnand %p2205_p4, %p2176_p1 }
  0xb1   : > { %p2212_p5 = por %p2211_p7, %p2210_p0 }
  0xb2   : > { %p2208_p11 = pneg %p2207_p9 }
  0xb3   : > { %p2214_p3 = por %p2213_p8, %p2212_p5 }
  0xb5   : > { %p2215_p12 = pnand %p2214_p3, %p2208_p11 }
  0xb7   : > { %2218 = shalt.err (!%p2215_p12)
}
  0xb8   : > { %s2219_s2 = scalar_lea.vmem %s306_s17, 128  ;;  %s2341_s20 = smov [#allocation7]  }
  0xb9   : > { %p2220_p6 = scmp.ne.s32.totalorder %s306_s17, %s2219_s2  ;;  %s2224_s9 = sshll.u32 %s2341_s20, 4  ;;  %s2225_s9 = int_to_ptr.vmem [resolvable:$false] %s2224_s9 }
  0xba   : > { %s2226_s7 = scalar_lea.vmem %s2225_s9, 256  ;;  %p2227_p9 = scmp.lt.s32.totalorder %s306_s17, %s2225_s9 }
  0xbb   : > { %p2222_p13 = pnand %p2220_p6, %p2176_p1  ;;  %p2228_p2 = scmp.lt.s32.totalorder %s2226_s7, %s2219_s2 }
  0xbd   : > { %p2223_p4 = pneg %p2222_p13  ;;  %p2229_p0 = por %p2228_p2, %p2227_p9 }
  0xbf   : > { %p2230_p7 = pnand %p2229_p0, %p2223_p4 }
  0xc1   : > { %2233 = shalt.err (!%p2230_p7)
}
  0xc2   : > { %1971 = dma.hbm_to_vmem [thread:$0]  (!%p2587_p10), %s2596_s11, 128, %s306_s17, %s295_s30  }
  0xc3   : > { %p2845_p11 = scmp.ne.s32.totalorder %s2831_s28, 0 }
  0xc4   : > { %s2647_s3 = sand.u32 (!%p2845_p11), 1, %s2316_s22   ;;  %p2846_p2 = scmp.ne.s32.totalorder (!%p2845_p11), %s2841_s8, 0 }
  0xc5   : > { %314 = sbr.rel (%p2845_p11) target bundleno = 2384 (0x950), region = 44  ;;  %s2650_s4 = sshll.u32 (!%p2845_p11), %s2647_s3, 3 }
  0xc6   : > { %s317_s14 = scalar_lea.sflag (!%p2845_p11), [#allocation5], %s2647_s3  ;;  %s320_s10 = scalar_lea.vmem (!%p2845_p11), [#allocation4], %s2650_s4 }
  0xcc   : > { %2287 = dma.done.wait (%p2846_p2), %s317_s14, 128  }
  0xcd   : > { %2289 = vsyncadd (%p2846_p2), %s317_s14, 4294967168  ;;  %s325_s28 = sand.u32 1, %s2415_s27   ;;  %s329_s11 = scalar_lea.vmem [#allocation7], %s2650_s4 }
  0xce   : > { %s326_s12 = scalar_lea.sflag [#allocation8], %s325_s28 }
  0xcf   : > { %2291 = dma.done.wait (%p2846_p2), %s326_s12, 128  }
  0xd0   : > { %2293 = vsyncadd (%p2846_p2), %s326_s12, 4294967168  ;;  %p2847_p10 = scmp.eq.s32.totalorder %s2415_s27, 0 }
  0xd2   : > { %2295 = dma.done.wait (%p2847_p10), [#allocation8], 512   ;;  %p2848_p1 = pmov %p2847_p10 }
  0xd4   : > { %2297 = vsyncadd (%p2848_p1), [#allocation8], 4294966784  ;;  %p2849_p5 = pmov %p2848_p1 }
  0xd5   : > { %p2850_p8 = pmov %p2848_p1 }
  0xd6   : > { %2299 = dma.done.wait (%p2849_p5), [#allocation11], 1024  }
  0xd7   : > { %2301 = vsyncadd (%p2850_p8), [#allocation11], 4294966272  ;;  %p2851_p3 = pmov %p2848_p1 }
  0xd8   : > { %p2852_p12 = pmov %p2848_p1 }
  0xd9   : > { %2303 = dma.done.wait (%p2851_p3), [#allocation14], 512  }
  0xda   : > { %2305 = vsyncadd (%p2852_p12), [#allocation14], 4294966784  ;;  %v2342_v0 = vmov 0.0|0.0   ;;  %vm2343_vm0 = vmmov 0   ;;  %v2344_v1 = vmov 0.0   ;;  %v384_v2 = vld [vmem:[#allocation10] sm:$0xff] }
  0xdb   : > { %1906 = vmatprep.subr.bf16.mxu0 %v2342_v0  ;;  %1821 = vmatprep.mubr.msk.f32.mxu0 %vm2343_vm0, %v2344_v1  ;;  %v385_v3 = vld [vmem:[#allocation10 + $0x8] sm:$0xff]  ;;  %v386_v4 = vld [vmem:[#allocation10 + $0x10] sm:$0xff]  ;;  %v387_v6 = vld [vmem:[#allocation10 + $0x18] sm:$0xff]  ;;  %vm388_vm1 = vcmask 261120   ;;  %vm623_vm2 = vcmask 64512   ;;  %s2345_s27 = smov 120  }
  0xdc   : > { %1912 = vmatprep.subr.bf16.mxu1 %v2342_v0  ;;  %1832 = vmatprep.mubr.msk.f32.mxu1 %vm2343_vm0, %v2344_v1  ;;  %v1907_v5 = vpack.c.bf16 %v385_v3, %v384_v2  ;;  %v1910_v7 = vpack.c.bf16 %v387_v6, %v386_v4  ;;  %v463_v8 = vld [vmem:[#allocation12] sm:$0xff]  ;;  %v464_v9 = vld [vmem:[#allocation12 + $0x8] sm:$0xff]  ;;  %v383_v13 = vld [vmem:[%s329_s11] sm:$0xff]  ;;  %s2346_s8 = smov 112   ;;  %s2347_s17 = smov 104  }
  0xdd   : > { %v539_v10 = vld [vmem:[#allocation9] sm:$0xff]  ;;  %v540_v11 = vld [vmem:[#allocation9 + $0x8] sm:$0xff]  ;;  %v1913_v12 = vpack.c.bf16 %v464_v9, %v463_v8  ;;  %v541_v15 = vld [vmem:[#allocation9 + $0x10] sm:$0xff]  ;;  %s1771_s30 = sshll.u32 %s2324_s24, 7  ;;  %s378_s18 = scalar_lea.vmem [#allocation15], %s2650_s4 }
  0xde   : > { %1908 = vmatpush3.bf16.msra.mxu0 %v1907_v5  ;;  %v1919_v14 = vpack.c.bf16 %v540_v11, %v539_v10  ;;  %v542_v16 = vld [vmem:[#allocation9 + $0x18] sm:$0xff]  ;;  %v538_v18 = vld [vmem:[%s320_s10] sm:$0xff]  ;;  %v465_v19 = vld [vmem:[#allocation12 + $0x10] sm:$0xff]  ;;  %s1590_s19 = sshll.u32 %s378_s18, 4  ;;  %s2765_s2 = scalar_lea.hbm %s2821_s6, %s1771_s30  ;;  %s2767_s19 = int_to_ptr.vmem [resolvable:$true] %s1590_s19 }
  0xdf   : > { %1909 = vmatprep.subr.bf16.mxu0 %v2342_v0  ;;  %1914 = vmatpush3.bf16.msra.mxu1 %v1913_v12  ;;  %v1922_v17 = vpack.c.bf16 %v542_v16, %v541_v15  ;;  %v466_v20 = vld [vmem:[#allocation12 + $0x18] sm:$0xff]  ;;  %v618_v53 = vld [vmem:[#allocation13 + $0x8] sm:$0xff]  ;;  %v617_v2 = vld [vmem:[#allocation13] sm:$0xff]  ;;  %s1576_s20 = scalar_lea.sflag [#allocation6], %s2647_s3  ;;  %s2234_s9 = scalar_lea.vmem %s2767_s19, 128 }
  0xe0   : > { %1915 = vmatprep.subr.bf16.mxu1 %v2342_v0  ;;  %v1916_v21 = vpack.c.bf16 %v466_v20, %v465_v19  ;;  %v619_v11 = vld [vmem:[#allocation13 + $0x10] sm:$0xff]  ;;  %p2235_p6 = scmp.ne.s32.totalorder %s2767_s19, %s2234_s9  ;;  %p2853_p13 = scmp.ne.s32.totalorder %s2842_s13, 0 }
  0xe1   : > { %s2348_s24 = smov [#allocation15]  }
  0xe2   : > { %1911 = vmatpush3.bf16.msra.mxu0 %v1910_v7  ;;  %p2236_p4 = pnand %p2235_p6, %p2853_p13  ;;  %s2238_s7 = sshll.u32 %s2348_s24, 4  ;;  %s2239_s7 = int_to_ptr.vmem [resolvable:$false] %s2238_s7 }
  0xe3   : > { %1918 = vmatprep.subr.bf16.mxu0 %v2342_v0  ;;  %1917 = vmatpush3.bf16.msra.mxu1 %v1916_v21  ;;  %s2240_s4 = scalar_lea.vmem %s2239_s7, 256  ;;  %p2241_p0 = scmp.lt.s32.totalorder %s2767_s19, %s2239_s7 }
  0xe4   : > { %1846 = vmatprep.subr.mxu1 %v2344_v1  ;;  %p2237_p9 = pneg %p2236_p4  ;;  %p2242_p7 = scmp.lt.s32.totalorder %s2240_s4, %s2234_s9 }
  0xe5   : > { %1822 = vmatmul.mubr.msk.f32.vlgmr.msra.gmra.mrb[0].mxu0 %vm388_vm1, %v383_v13 }
  0xe6   : > { %1920 = vmatpush3.bf16.msra.mxu0 %v1919_v14  ;;  %1843 = vmatprep.mubr.msk.f32.mxu0 %vm2343_vm0, %v2344_v1  ;;  %p2243_p11 = por %p2242_p7, %p2241_p0 }
  0xe7   : > { %1921 = vmatprep.subr.bf16.mxu0 %v2342_v0  ;;  %1833 = vmatmul.mubr.msk.f32.vlgmr.msra.gmra.mrb[0].mxu1 %vm388_vm1, %v383_v13 }
  0xe8   : > { %1848 = vmatprep.mubr.msk.f32.mxu1 %vm2343_vm0, %v2344_v1  ;;  %p2244_p2 = pnand %p2243_p11, %p2237_p9 }
  0xea   : > { %1923 = vmatpush3.bf16.msra.mxu0 %v1922_v17 }
  0xeb   : > { %1866 = vmatprep.subr.mxu0 %v2344_v1 }
  0xed   : > { %1844 = vmatmul.mubr.msk.f32.vlgmr.msra.gmra.mrb[2].mxu0 %vm388_vm1, %v538_v18 }
  0xee   : > { %1868 = vmatprep.mubr.msk.f32.mxu0 %vm2343_vm0, %v2344_v1  ;;  %1867 = vmatpush3.msra.mxu0 %v618_v53 }
  0xef   : > { %1871 = vmatprep.subr.mxu0 %v2344_v1 }
 0x1b8   : > { %v458_v22 = vpop.f32.mrb[0].mxu0 }
 0x1b9   : > { %462 = vst.msk [vmem:[#allocation2] sm:$0xff] %vm388_vm1, %v458_v22  ;;  %v1823_v23 = vpop.f32.mrb[1].mxu0 }
 0x1ba   : > { %v533_v27 = vpop.f32.mrb[0].mxu1 }
 0x1bb   : > { %537 = vst.msk [vmem:[#allocation3] sm:$0xff] %vm388_vm1, %v533_v27  ;;  %v1834_v28 = vpop.f32.mrb[1].mxu1 }
 0x1c0   : > { %v621_v24 = vld [vmem:[#allocation2] sm:$0xff]  ;;  %v613_v25 = vpop.f32.mrb[2].mxu0 }
 0x1c1   : > { %1847 = vmatpush3.xpose.msk.msra.mxu1 %vm623_vm2, %v621_v24  ;;  %v1845_v26 = vpop.f32.mrb[3].mxu0  ;;  %784 = vrot.lane.b32.xlu1 %v613_v25, %s2345_s27 }
 0x1c2   : > { %1851 = vmatprep.subr.mxu1 %v2344_v1  ;;  %v2702_v29 = vld [vmem:[#allocation3] sm:$0xff] }
 0x1c3   : > { %v620_v26 = vld [vmem:[#allocation13 + $0x18] sm:$0xff] }
 0x1c4   : > { %1849 = vmatmul.mubr.msk.f32.vlgmr.msra.gmra.mrb[2].mxu1 %vm623_vm2, %v613_v25 }
 0x1c5   : > { %1853 = vmatprep.mubr.msk.f32.mxu1 %vm2343_vm0, %v2344_v1  ;;  %1852 = vmatpush3.msra.mxu1 %v2702_v29 }
 0x1c6   : > { %1856 = vmatprep.subr.mxu1 %v2344_v1 }
 0x233   : > { %v785_v38 = vpop.permute.xlu1 %784 }
 0x297   : > { %v696_v30 = vpop.f32.mrb[2].mxu1 }
 0x298   : > { %v1850_v31 = vpop.f32.mrb[3].mxu1  ;;  %v700_v32 = vsel %vm623_vm2, %v696_v30, -inf }
 0x299   : > { %701 = vmax.xlane.f32.xlu0 %v700_v32 }
 0x2af   : > { %786 = vrot.lane.b32.xlu0 %v621_v24, %s2345_s27 }
 0x2b3   : > { %873 = vrot.lane.b32.xlu0 %v2702_v29, %s2345_s27 }
 0x2b7   : > { %1098 = vrot.lane.b32.xlu0 %v621_v24, %s2346_s8 }
 0x2bb   : > { %1096 = vrot.lane.b32.xlu0 %v613_v25, %s2346_s8 }
 0x326   : > { %v702_v33 = vpop.xlane.xlu0 %701 }
 0x327   : > { %v703_v34 = vsub.f32 %v696_v30, %v702_v33 }
 0x329   : > { %v704_v35 = vmul.f32 1.442695, %v703_v34 }
 0x32a   : > { %v787_v36 = vpop.permute.xlu0 %786 }
 0x32b   : > { %2046 = vpow2.f32 %v704_v35 }
 0x32e   : > { %v874_v39 = vpop.permute.xlu0 %873 }
 0x332   : > { %v1099_v48 = vpop.permute.xlu0 %1098 }
 0x335   : > { %v2047_v37 = vpop.eup %2046 }
 0x336   : > { %1854 = vmatmul.mubr.msk.f32.vlgmr.msra.gmra.mrb[4].mxu1 %vm623_vm2, %v2047_v37  ;;  %v1097_v51 = vpop.permute.xlu0 %1096  ;;  %v706_v0 = vsel %vm623_vm2, %v2047_v37, 0.0 }
 0x337   : > { %1857 = vmatpush3.xpose.msk.msra.mxu1 %vm623_vm2, %v787_v36  ;;  %1858 = vmatprep.mubr.msk.f32.mxu1 %vm2343_vm0, %v2344_v1 }
 0x338   : > { %1861 = vmatprep.subr.mxu1 %v2344_v1 }
 0x33a   : > { %1859 = vmatmul.mubr.msk.f32.vlgmr.msra.gmra.mrb[6].mxu1 %vm623_vm2, %v785_v38 }
 0x33b   : > { %1862 = vmatpush3.msra.mxu1 %v874_v39  ;;  %1863 = vmatprep.mubr.msk.f32.mxu1 %vm2343_vm0, %v2344_v1 }
 0x33c   : > { %1876 = vmatprep.subr.mxu1 %v2344_v1 }
 0x409   : > { %v779_v40 = vpop.f32.mrb[4].mxu1 }
 0x40a   : > { %v1855_v41 = vpop.f32.mrb[5].mxu1 }
 0x40d   : > { %v858_v42 = vpop.f32.mrb[6].mxu1 }
 0x40e   : > { %v1860_v43 = vpop.f32.mrb[7].mxu1  ;;  %v862_v44 = vsel %vm623_vm2, %v858_v42, -inf }
 0x40f   : > { %863 = vmax.xlane.f32.xlu1 %v862_v44 }
 0x420   : > { %1184 = vrot.lane.b32.xlu1 %v2702_v29, %s2346_s8 }
 0x424   : > { %1337 = vrot.lane.b32.xlu1 %v621_v24, %s2347_s17 }
 0x428   : > { %1335 = vrot.lane.b32.xlu1 %v613_v25, %s2347_s17 }
 0x49c   : > { %v864_v45 = vpop.xlane.xlu1 %863 }
 0x49d   : > { %v865_v46 = vsub.f32 %v858_v42, %v864_v45 }
 0x49f   : > { %v866_v47 = vmul.f32 1.442695, %v865_v46 }
 0x4a0   : > { %v1185_v52 = vpop.permute.xlu1 %1184 }
 0x4a1   : > { %2048 = vpow2.f32 %v866_v47 }
 0x4a4   : > { %v1338_v54 = vpop.permute.xlu1 %1337 }
 0x4a8   : > { %v1336_v55 = vpop.permute.xlu1 %1335 }
 0x4ab   : > { %v2049_v49 = vpop.eup %2048 }
 0x4ac   : > { %1864 = vmatmul.mubr.msk.f32.vlgmr.msra.gmra.mrb[8].mxu1 %vm623_vm2, %v2049_v49  ;;  %v868_v50 = vsel %vm623_vm2, %v2049_v49, 0.0 }
 0x4ad   : > { %1877 = vmatpush3.xpose.msk.msra.mxu1 %vm623_vm2, %v1099_v48  ;;  %869 = vadd.xlane.f32.xlu1 %v868_v50 }
 0x4ae   : > { %1878 = vmatprep.mubr.msk.f32.mxu1 %vm2343_vm0, %v2344_v1  ;;  %1881 = vmatprep.subr.mxu1 %v2344_v1 }
 0x4b0   : > { %1879 = vmatmul.mubr.msk.f32.vlgmr.msra.gmra.mrb[10].mxu1 %vm623_vm2, %v1097_v51 }
 0x4b1   : > { %1882 = vmatpush3.msra.mxu1 %v1185_v52  ;;  %1883 = vmatprep.mubr.msk.f32.mxu1 %vm2343_vm0, %v2344_v1 }
 0x4b2   : > { %1891 = vmatprep.subr.mxu1 %v2344_v1 }
 0x53a   : > { %v870_v56 = vpop.xlane.xlu1 %869 }
 0x53b   : > { %2050 = vrcp.f32 %v870_v56 }
 0x545   : > { %v2051_v57 = vpop.eup %2050 }
 0x57f   : > { %v945_v58 = vpop.f32.mrb[8].mxu1 }
 0x580   : > { %v949_v59 = vmul.f32 %v2051_v57, %v945_v58  ;;  %v1865_v60 = vpop.f32.mrb[9].mxu1 }
 0x582   : > { %1869 = vmatmul.mubr.msk.f32.vlgmr.msra.gmra.mrb[4].mxu0 %vm623_vm2, %v949_v59 }
 0x583   : > { %v1170_v61 = vpop.f32.mrb[10].mxu1  ;;  %1873 = vmatprep.mubr.msk.f32.mxu0 %vm2343_vm0, %v2344_v1  ;;  %1872 = vmatpush3.msra.mxu0 %v617_v2 }
 0x584   : > { %v1880_v62 = vpop.f32.mrb[11].mxu1  ;;  %v1174_v63 = vsel %vm623_vm2, %v1170_v61, -inf  ;;  %1886 = vmatprep.subr.mxu0 %v2344_v1 }
 0x585   : > { %1175 = vmax.xlane.f32.xlu0 %v1174_v63 }
 0x589   : > { %707 = vadd.xlane.f32.xlu0 %v706_v0 }
 0x612   : > { %v1176_v3 = vpop.xlane.xlu0 %1175 }
 0x613   : > { %v1177_v4 = vsub.f32 %v1170_v61, %v1176_v3 }
 0x615   : > { %v1178_v5 = vmul.f32 1.442695, %v1177_v4 }
 0x616   : > { %v708_v6 = vpop.xlane.xlu0 %707 }
 0x617   : > { %2052 = vpow2.f32 %v1178_v5 }
 0x618   : > { %2054 = vrcp.f32 %v708_v6 }
 0x621   : > { %v2053_v7 = vpop.eup %2052 }
 0x622   : > { %v2055_v8 = vpop.eup %2054  ;;  %1884 = vmatmul.mubr.msk.f32.vlgmr.msra.gmra.mrb[12].mxu1 %vm623_vm2, %v2053_v7  ;;  %v1180_v9 = vsel %vm623_vm2, %v2053_v7, 0.0 }
 0x623   : > { %v783_v10 = vmul.f32 %v2055_v8, %v779_v40  ;;  %1892 = vmatpush3.xpose.msk.msra.mxu1 %vm623_vm2, %v1338_v54  ;;  %1181 = vadd.xlane.f32.xlu0 %v1180_v9 }
 0x624   : > { %1893 = vmatprep.mubr.msk.f32.mxu1 %vm2343_vm0, %v2344_v1 }
 0x625   : > { %1874 = vmatmul.mubr.msk.f32.vlgmr.msra.gmra.mrb[4].mxu0 %vm623_vm2, %v783_v10 }
 0x626   : > { %1894 = vmatmul.mubr.msk.f32.vlgmr.msra.gmra.mrb[14].mxu1 %vm623_vm2, %v1336_v55  ;;  %1888 = vmatprep.mubr.msk.f32.mxu0 %vm2343_vm0, %v2344_v1 }
 0x627   : > { %1887 = vmatpush3.msra.mxu0 %v619_v11 }
 0x628   : > { %1896 = vmatprep.subr.mxu0 %v2344_v1 }
 0x6b0   : > { %v1182_v12 = vpop.xlane.xlu0 %1181 }
 0x6b1   : > { %2056 = vrcp.f32 %v1182_v12 }
 0x6bb   : > { %v2057_v13 = vpop.eup %2056 }
 0x6f5   : > { %v1256_v14 = vpop.f32.mrb[12].mxu1 }
 0x6f6   : > { %v1260_v15 = vmul.f32 %v2057_v13, %v1256_v14  ;;  %v1885_v16 = vpop.f32.mrb[13].mxu1 }
 0x6f8   : > { %1889 = vmatmul.mubr.msk.f32.vlgmr.msra.gmra.mrb[4].mxu0 %vm623_vm2, %v1260_v15 }
 0x6f9   : > { %v1409_v17 = vpop.f32.mrb[14].mxu1  ;;  %1898 = vmatprep.mubr.msk.f32.mxu0 %vm2343_vm0, %v2344_v1 }
 0x6fa   : > { %v1895_v18 = vpop.f32.mrb[15].mxu1  ;;  %v1413_v19 = vsel %vm623_vm2, %v1409_v17, -inf }
 0x6fb   : > { %1414 = vmax.xlane.f32.xlu0 %v1413_v19 }
 0x711   : > { %1423 = vrot.lane.b32.xlu0 %v2702_v29, %s2347_s17 }
 0x788   : > { %v1415_v20 = vpop.xlane.xlu0 %1414 }
 0x789   : > { %v1416_v21 = vsub.f32 %v1409_v17, %v1415_v20 }
 0x78b   : > { %v1417_v22 = vmul.f32 1.442695, %v1416_v21 }
 0x78c   : > { %v1424_v23 = vpop.permute.xlu0 %1423 }
 0x78d   : > { %2058 = vpow2.f32 %v1417_v22  ;;  %1897 = vmatpush3.msra.mxu0 %v1424_v23 }
 0x78e   : > { %1901 = vmatprep.subr.mxu0 %v2344_v1 }
 0x797   : > { %v2059_v24 = vpop.eup %2058 }
 0x798   : > { %1899 = vmatmul.mubr.msk.f32.vlgmr.msra.gmra.mrb[6].mxu0 %vm623_vm2, %v2059_v24  ;;  %v1419_v25 = vsel %vm623_vm2, %v2059_v24, 0.0 }
 0x799   : > { %1420 = vadd.xlane.f32.xlu1 %v1419_v25  ;;  %1903 = vmatprep.mubr.msk.f32.mxu0 %vm2343_vm0, %v2344_v1 }
 0x79a   : > { %1902 = vmatpush3.msra.mxu0 %v620_v26 }
 0x826   : > { %v1421_v27 = vpop.xlane.xlu1 %1420 }
 0x827   : > { %2060 = vrcp.f32 %v1421_v27 }
 0x831   : > { %v2061_v28 = vpop.eup %2060 }
 0x86b   : > { %v1495_v29 = vpop.f32.mrb[6].mxu0 }
 0x86c   : > { %v1499_v30 = vmul.f32 %v2061_v28, %v1495_v29  ;;  %v1900_v31 = vpop.f32.mrb[7].mxu0 }
 0x86e   : > { %1904 = vmatmul.mubr.msk.f32.vlgmr.msra.gmra.mrb[4].mxu0 %vm623_vm2, %v1499_v30 }
 0x941   : > { %v1569_v1 = vpop.f32.mrb[4].mxu0 }
 0x942   : > { %1574 = vst.msk [vmem:[%s378_s18] sm:$0xff] %vm388_vm1, %v1569_v1  ;;  %v1905_v32 = vpop.f32.mrb[5].mxu0 }
 0x943   : > { %2247 = shalt.err (!%p2244_p2)
}
 0x944   : > { %s2248_s3 = scalar_lea.hbm %s2765_s2, 128  ;;  %s2252_s28 = scalar_lea.hbm %s2821_s6, 256 }
 0x945   : > { %p2249_p10 = scmp.ne.s32.totalorder %s2765_s2, %s2248_s3  ;;  %p2253_p8 = scmp.lt.u32.totalorder %s2765_s2, %s2821_s6 }
 0x946   : > { %p2254_p3 = scmp.lt.u32.totalorder %s2252_s28, %s2248_s3  ;;  %p2256_p6 = scmp.lt.u32.totalorder %s2248_s3, %s2765_s2 }
 0x947   : > { %p2250_p1 = pnand %p2249_p10, %p2853_p13 }
 0x948   : > { %p2255_p12 = por %p2254_p3, %p2253_p8 }
 0x949   : > { %p2251_p5 = pneg %p2250_p1 }
 0x94a   : > { %p2257_p4 = por %p2256_p6, %p2255_p12 }
 0x94c   : > { %p2258_p9 = pnand %p2257_p4, %p2251_p5 }
 0x94e   : > { %2261 = shalt.err (!%p2258_p9)
}
 0x94f   : > { %1950 = dma.vmem_to_hbm [thread:$0]  (%p2853_p13), %s2767_s19, 128, %s2765_s2, %s1576_s20  }
 0x950 PF: > { %s1602_s27 = sand.u32 1, %s2312_s21   ;;  %p2854_p0 = scmp.ne.s32.totalorder %s2843_s16, 0 }
 0x951   : > { %p2855_p7 = scmp.ge.s32.totalorder %s2332_s26, 2  ;;  %s1603_s8 = scalar_lea.sflag [#allocation6], %s1602_s27 }
 0x953   : > { %p1973_p11 = pnand %p2855_p7, %p2854_p0 }
 0x955   : > { %2307 = dma.done.wait (!%p1973_p11), %s1603_s8, 128  }
 0x956   : > { %2309 = vsyncadd (!%p1973_p11), %s1603_s8, 4294967168  ;;  %s27_s26 = sadd.s32 1, %s2332_s26   ;;  %s2856_s13 = sld [smem:[#allocation22_spill]] }
 0x957   : > { %p24_p2 = scmp.ge.s32.totalorder %s27_s26, 4   ;;  %s2857_s21 = smov %s2316_s22 }
 0x958   : > { %s2858_s22 = smov %s2320_s23  ;;  %s2859_s23 = smov %s2568_s15 }
 0x959   : > { %s2860_s24 = smov %s2328_s25  ;;  %26 = sbr.rel (!%p24_p2) target bundleno = 15 (0xf), region = 122 }
 0x95c   : > { %s2861_s25 = smov %s2856_s13 }
 0x960   :  { %1608 = vsyncpa [#allocation5], 1 }
 0x961   :  { %1610 = vsyncpa [#allocation5 + $0x1], 1 }
 0x962   :  { %1611 = vsyncpa [#allocation8], 1 }
 0x963   :  { %1613 = vsyncpa [#allocation8 + $0x1], 1 }
 0x964   :  { %1614 = vsyncpa [#allocation11], 1 }
 0x965   :  { %1615 = vsyncpa [#allocation14], 1 }
 0x966   :  { %1616 = vsyncpa [#allocation6], 1 }
 0x967   :  { %1618 = vsyncpa [#allocation6 + $0x1], 1 }

</bundles_post_ra>
